<compile_context>
chip_gen: v6e
topology: v6e:2x2x1
jax: 0.10.0
libtpu: 0.0.40
codegen_flags: <defaults>
</compile_context>

<pallas_src>
import math

import jax
import jax.numpy as jnp
from jax import lax
from jax.experimental import pallas as pl
from jax.experimental.pallas import tpu as pltpu


# ---------------------------------------------------------------------------
# Kernels
# ---------------------------------------------------------------------------

def _parallel_linear_kernel_2d(x_ref, w_ref, b_ref, o_ref, acc_ref):
    """One P group per grid step (leading dim squeezed).

    x_ref: (tb, tk)  w_ref: (tk, to)  b_ref: (1, to)
    o_ref: (tb, to)  acc_ref: (tb, to) f32
    """
    k = pl.program_id(3)

    @pl.when(k == 0)
    def _():
        # Seed the accumulator with the (broadcast) bias -> finalize is a pure cast.
        acc_ref[...] = jnp.zeros_like(acc_ref) + b_ref[...].astype(jnp.float32)

    # Standard (m,k)x(k,n) contraction -> straight MXU matmul, no transpose.
    acc_ref[...] += jnp.dot(x_ref[...], w_ref[...],
                            preferred_element_type=jnp.float32)

    @pl.when(k == pl.num_programs(3) - 1)
    def _():
        o_ref[...] = acc_ref[...].astype(o_ref.dtype)


def _parallel_linear_kernel_batched(x_ref, w_ref, b_ref, o_ref, acc_ref):
    """Several P groups per grid step (batched matmul).

    x_ref: (pblk, tb, tk)  w_ref: (pblk, tk, to)  b_ref: (pblk, 1, to)
    o_ref: (pblk, tb, to)  acc_ref: (pblk, tb, to) f32
    """
    k = pl.program_id(3)

    @pl.when(k == 0)
    def _():
        acc_ref[...] = jnp.zeros_like(acc_ref) + b_ref[...].astype(jnp.float32)

    acc_ref[...] += lax.dot_general(
        x_ref[...], w_ref[...],
        dimension_numbers=(((2,), (1,)), ((0,), (0,))),
        preferred_element_type=jnp.float32,
    )

    @pl.when(k == pl.num_programs(3) - 1)
    def _():
        o_ref[...] = acc_ref[...].astype(o_ref.dtype)


# ---------------------------------------------------------------------------
# Wrapper helpers
# ---------------------------------------------------------------------------

def _round_up(v, m):
    return ((v + m - 1) // m) * m


def _pad_to(a, shape):
    pads = [(0, t - s) for s, t in zip(a.shape, shape)]
    if not any(p[1] for p in pads):
        return a
    return jnp.pad(a, pads)


def _largest_divisor_tile(dim, unit, cap_elems):
    """dim is a multiple of `unit`; return the largest t = unit*d with
    d | (dim // unit) and t <= max(cap_elems, unit)."""
    n = dim // unit
    cap_units = max(1, cap_elems // unit)
    best = 1
    for d in range(1, n + 1):
        if n % d == 0 and d <= cap_units:
            best = d
    return best * unit


def _largest_divisor_leq(n, cap):
    cap = max(1, min(n, cap))
    for d in range(cap, 0, -1):
        if n % d == 0:
            return d
    return 1


def _vmem_budget_bytes():
    cap = None
    try:
        info = pltpu.get_tpu_info()
        cap = getattr(info, "vmem_capacity_bytes", None)
    except Exception:
        cap = None
    if not cap:
        cap = 64 * 1024 * 1024  # conservative fallback (v7x per-TC physical)
    # Leave headroom for Mosaic internals; cap at ~100 MiB on the 128 MiB chips.
    return min(int(0.75 * int(cap)), 100 * 1024 * 1024)


# ---------------------------------------------------------------------------
# Wrapper
# ---------------------------------------------------------------------------

def parallel_linear(x, weight, bias):
    """x: [P,B,I], weight: [P,O,I], bias: [P,1,O] -> [P,B,O]"""
    P, B, I = x.shape
    Pw, O, Iw = weight.shape
    assert P == Pw and I == Iw
    assert bias.shape == (P, 1, O)
    out_dtype = x.dtype
    itemsize = jnp.dtype(x.dtype).itemsize

    # ---- lane / sublane alignment (lane-dense output and inputs) ----
    Bp = _round_up(B, 8)      # sublane
    Op = _round_up(O, 128)    # lane (output last dim -> unmasked vst)
    Ip = _round_up(I, 128)    # lane (contraction dim)

    vmem_budget = _vmem_budget_bytes()

    # ---- tiles: divisors of the aligned dims (no extra zero work) ----
    tb = _largest_divisor_tile(Bp, 8, 512)
    to = _largest_divisor_tile(Op, 128, 512)

    # K tile: full K when the double-buffered x/w tiles fit the budget,
    # else the largest 128-multiple divisor of Ip that does (f32 footprint).
    fixed_bytes = 4 * (2 * to + 3 * tb * to)            # 2x bias + 2x out + acc
    avail = max(vmem_budget - fixed_bytes, 4 * 2 * (tb + to) * 128)
    tk_cap = avail // (4 * 2 * (tb + to))               # 2x x-tile + 2x w-tile / K step
    tk = _largest_divisor_tile(Ip, 128, tk_cap)

    # ---- batch several P groups per grid step for tiny per-P matmuls ----
    work = tb * to * tk
    target_work = 128 * 256 * 512
    # double-buffered inputs + double-buffered output + acc scratch, per P group
    per_p_bytes = 4 * (2 * tb * tk + 2 * tk * to + 2 * to + 2 * tb * to + tb * to)
    caps = [max(1, target_work // max(work, 1)),
            max(1, vmem_budget // per_p_bytes)]
    other_steps = (Bp // tb) * (Op // to)
    if other_steps == 1 and P >= 2:
        caps.append(P // 2)   # keep >= 2 parallel grid steps (v7x has 2 TCs)
    pblk = _largest_divisor_leq(P, min(caps))

    # ---- padding (padded K columns contribute exactly 0; padded B/O sliced) ----
    xp = _pad_to(x, (P, Bp, Ip))
    wtp = _pad_to(jnp.swapaxes(weight, 1, 2), (P, Ip, Op))   # [P, I, O], one-time
    bp = _pad_to(bias, (P, 1, Op))

    grid = (P // pblk, Bp // tb, Op // to, Ip // tk)

    if pblk == 1:
        kernel = _parallel_linear_kernel_2d
        in_specs = [
            pl.BlockSpec((None, tb, tk), lambda p, i, j, k: (p, i, k)),
            pl.BlockSpec((None, tk, to), lambda p, i, j, k: (p, k, j)),
            pl.BlockSpec((None, 1, to), lambda p, i, j, k: (p, 0, j)),
        ]
        out_spec = pl.BlockSpec((None, tb, to), lambda p, i, j, k: (p, i, j))
        acc_shape = pltpu.VMEM((tb, to), jnp.float32)
    else:
        kernel = _parallel_linear_kernel_batched
        in_specs = [
            pl.BlockSpec((pblk, tb, tk), lambda p, i, j, k: (p, i, k)),
            pl.BlockSpec((pblk, tk, to), lambda p, i, j, k: (p, k, j)),
            pl.BlockSpec((pblk, 1, to), lambda p, i, j, k: (p, 0, j)),
        ]
        out_spec = pl.BlockSpec((pblk, tb, to), lambda p, i, j, k: (p, i, j))
        acc_shape = pltpu.VMEM((pblk, tb, to), jnp.float32)

    cost = pl.CostEstimate(
        flops=2 * P * B * I * O,
        transcendentals=0,
        bytes_accessed=itemsize * (P * B * I + P * O * I + P * B * O + P * O),
    )

    out_padded = pl.pallas_call(
        kernel,
        out_shape=jax.ShapeDtypeStruct((P, Bp, Op), out_dtype),
        grid_spec=pltpu.PrefetchScalarGridSpec(
            num_scalar_prefetch=0,
            grid=grid,
            in_specs=in_specs,
            out_specs=out_spec,
            scratch_shapes=[acc_shape],
        ),
        compiler_params=pltpu.CompilerParams(
            dimension_semantics=("parallel", "parallel", "parallel", "arbitrary"),
            vmem_limit_bytes=vmem_budget,
        ),
        cost_estimate=cost,
    )(xp, wtp, bp)

    return out_padded[:, :B, :O]


# ---------------------------------------------------------------------------
# Init (matches the PyTorch module's reset_parameters shapes/bounds)
# ---------------------------------------------------------------------------

def init_params(key, input_dim, output_dim, parallel_dim, dtype=jnp.float32):
    kw, kb = jax.random.split(key)
    # kaiming_uniform_(a=sqrt(5)) on a 3D (P, O, I) tensor: fan_in = O * I.
    fan_in = output_dim * input_dim
    bound = 1.0 / math.sqrt(fan_in)
    weight = jax.random.uniform(
        kw, (parallel_dim, output_dim, input_dim), dtype, minval=-bound, maxval=bound)
    bias = jax.random.uniform(
        kb, (parallel_dim, 1, output_dim), dtype, minval=-bound, maxval=bound)
    return weight, bias


# ---------------------------------------------------------------------------
# Demo / correctness check
# ---------------------------------------------------------------------------

if __name__ == "__main__":
    key = jax.random.PRNGKey(0)

    # --- Test 1: small shapes matching the module's forward (batched-P path) ---
    P, B, I, O = 4, 8, 32, 16
    k1, k2, key = jax.random.split(key, 3)
    x = jax.random.normal(k1, (P, B, I), jnp.float32)
    weight, bias = init_params(k2, I, O, P)

    out = jax.block_until_ready(parallel_linear(x, weight, bias))
    ref = jnp.einsum("pbi,poi->pbo", x, weight) + bias
    assert out.shape == (P, B, O)
    assert jnp.allclose(out, ref, atol=1e-4, rtol=1e-4)

    # --- Test 2: exercises the tiled (pblk==1) path with full-K tile and
    #     O padding / output slicing. ---
    P2, B2, I2, O2 = 2, 128, 768, 200
    k3, k4, key = jax.random.split(key, 3)
    x2 = jax.random.normal(k3, (P2, B2, I2), jnp.float32)
    w2, b2 = init_params(k4, I2, O2, P2)

    out2 = jax.block_until_ready(parallel_linear(x2, w2, b2))
    ref2 = jnp.einsum("pbi,poi->pbo", x2, w2) + b2
    assert out2.shape == (P2, B2, O2)
    assert jnp.allclose(out2, ref2, atol=1e-4, rtol=1e-4)

    print("KERNEL_OK")
</pallas_src>

<mosaic_0001>
module attributes {stable_mosaic.version = 11 : i64} {
  func.func @_parallel_linear_kernel_batched(%arg0: i32, %arg1: i32, %arg2: i32, %arg3: i32, %arg4: memref<2x8x128xf32, #tpu.memory_space<vmem>>, %arg5: memref<2x128x128xf32, #tpu.memory_space<vmem>>, %arg6: memref<2x1x128xf32, #tpu.memory_space<vmem>>, %arg7: memref<2x8x128xf32, #tpu.memory_space<vmem>>, %arg8: memref<2x8x128xf32, #tpu.memory_space<vmem>>) attributes {dimension_semantics = [#tpu.dimension_semantics<parallel>, #tpu.dimension_semantics<parallel>, #tpu.dimension_semantics<parallel>, #tpu.dimension_semantics<arbitrary>], iteration_bounds = array<i64: 2, 1, 1, 1>, scalar_prefetch = 0 : i64, scratch_operands = 1 : i64, tpu.core_type = #tpu.core_type<tc>, window_params = [{transform_indices = @transform_0, window_bounds = array<i64: 2, 8, 128>}, {transform_indices = @transform_1, window_bounds = array<i64: 2, 128, 128>}, {transform_indices = @transform_2, window_bounds = array<i64: 2, 1, 128>}, {transform_indices = @transform_3, window_bounds = array<i64: 2, 8, 128>}]} {
    %c0_i32 = arith.constant 0 : i32
    %0 = arith.cmpi eq, %arg3, %c0_i32 : i32
    %1 = arith.extui %0 : i1 to i32
    %c0_i32_0 = arith.constant 0 : i32
    %2 = arith.cmpi ne, %1, %c0_i32_0 : i32
    scf.if %2 {
      %cst_14 = arith.constant 0.000000e+00 : f32
      %12 = vector.broadcast %cst_14 : f32 to vector<2x8x128xf32>
      %c0_15 = arith.constant 0 : index
      %c0_16 = arith.constant 0 : index
      %c0_17 = arith.constant 0 : index
      %13 = vector.load %arg6[%c0_15, %c0_16, %c0_17] : memref<2x1x128xf32, #tpu.memory_space<vmem>>, vector<2x1x128xf32>
      %14 = vector.broadcast %13 : vector<2x1x128xf32> to vector<2x8x128xf32>
      %15 = arith.addf %12, %14 : vector<2x8x128xf32>
      %c0_18 = arith.constant 0 : index
      %c0_19 = arith.constant 0 : index
      %c0_20 = arith.constant 0 : index
      %16 = vector.load %arg8[%c0_18, %c0_19, %c0_20] : memref<2x8x128xf32, #tpu.memory_space<vmem>>, vector<2x8x128xf32>
      tpu.vector_store %arg8[%c0_18, %c0_19, %c0_20], %15 {strides = array<i32>} : memref<2x8x128xf32, #tpu.memory_space<vmem>>, vector<2x8x128xf32>,
    } else {
    }
    %c0 = arith.constant 0 : index
    %c0_1 = arith.constant 0 : index
    %c0_2 = arith.constant 0 : index
    %3 = vector.load %arg8[%c0, %c0_1, %c0_2] : memref<2x8x128xf32, #tpu.memory_space<vmem>>, vector<2x8x128xf32>
    %c0_3 = arith.constant 0 : index
    %c0_4 = arith.constant 0 : index
    %c0_5 = arith.constant 0 : index
    %4 = vector.load %arg4[%c0_3, %c0_4, %c0_5] : memref<2x8x128xf32, #tpu.memory_space<vmem>>, vector<2x8x128xf32>
    %c0_6 = arith.constant 0 : index
    %c0_7 = arith.constant 0 : index
    %c0_8 = arith.constant 0 : index
    %5 = vector.load %arg5[%c0_6, %c0_7, %c0_8] : memref<2x128x128xf32, #tpu.memory_space<vmem>>, vector<2x128x128xf32>
    %cst = arith.constant dense<0.000000e+00> : vector<2x8x128xf32>
    %6 = tpu.matmul %4, %5, %cst {dimension_numbers = #tpu.dot_dimension_numbers<[2], [1], [1], [2], [0, 0, 0, 1, 1, 2], [0], [0]>} : vector<2x8x128xf32>, vector<2x128x128xf32>, vector<2x8x128xf32> -> vector<2x8x128xf32>
    %7 = arith.addf %3, %6 : vector<2x8x128xf32>
    %c0_9 = arith.constant 0 : index
    %c0_10 = arith.constant 0 : index
    %c0_11 = arith.constant 0 : index
    %8 = vector.load %arg8[%c0_9, %c0_10, %c0_11] : memref<2x8x128xf32, #tpu.memory_space<vmem>>, vector<2x8x128xf32>
    tpu.vector_store %arg8[%c0_9, %c0_10, %c0_11], %7 {strides = array<i32>} : memref<2x8x128xf32, #tpu.memory_space<vmem>>, vector<2x8x128xf32>,
    %c0_i32_12 = arith.constant 0 : i32
    %9 = arith.cmpi eq, %arg3, %c0_i32_12 : i32
    %10 = arith.extui %9 : i1 to i32
    %c0_i32_13 = arith.constant 0 : i32
    %11 = arith.cmpi ne, %10, %c0_i32_13 : i32
    scf.if %11 {
      %c0_14 = arith.constant 0 : index
      %c0_15 = arith.constant 0 : index
      %c0_16 = arith.constant 0 : index
      %12 = vector.load %arg8[%c0_14, %c0_15, %c0_16] : memref<2x8x128xf32, #tpu.memory_space<vmem>>, vector<2x8x128xf32>
      %c0_17 = arith.constant 0 : index
      %c0_18 = arith.constant 0 : index
      %c0_19 = arith.constant 0 : index
      %13 = vector.load %arg7[%c0_17, %c0_18, %c0_19] : memref<2x8x128xf32, #tpu.memory_space<vmem>>, vector<2x8x128xf32>
      tpu.vector_store %arg7[%c0_17, %c0_18, %c0_19], %12 {strides = array<i32>} : memref<2x8x128xf32, #tpu.memory_space<vmem>>, vector<2x8x128xf32>,
    } else {
    }
    return
  }
  func.func @transform_0(%arg0: i32, %arg1: i32, %arg2: i32, %arg3: i32) -> (i32, i32, i32) {
    %c0_i32 = arith.constant 0 : i32
    return %arg0, %arg1, %arg3 : i32, i32, i32
  }
  func.func @transform_1(%arg0: i32, %arg1: i32, %arg2: i32, %arg3: i32) -> (i32, i32, i32) {
    %c0_i32 = arith.constant 0 : i32
    return %arg0, %arg3, %arg2 : i32, i32, i32
  }
  func.func @transform_2(%arg0: i32, %arg1: i32, %arg2: i32, %arg3: i32) -> (i32, i32, i32) {
    %c0_i32 = arith.constant 0 : i32
    %c0_i32_0 = arith.constant 0 : i32
    return %arg0, %c0_i32, %arg2 : i32, i32, i32
  }
  func.func @transform_3(%arg0: i32, %arg1: i32, %arg2: i32, %arg3: i32) -> (i32, i32, i32) {
    %c0_i32 = arith.constant 0 : i32
    return %arg0, %arg1, %arg2 : i32, i32, i32
  }
}

</mosaic_0001>

<bundles_post_ra>
// kernel: tpu_custom_call.1
= control target key start
LH: loop header
LB: loop body
LE: loop exit
PB: predicated region body
PF: predicated region fallthrough
CT: control target
= control target key end

     0   :  { %s1377_s0 = inlined_call_operand.hbm [shape: f32[4,8,128], index: 0, kind: input, shape index: {}]   ;;  %s1378_s1 = inlined_call_operand.hbm [shape: f32[4,128,128], index: 1, kind: input, shape index: {}]   ;;  %s1379_s2 = inlined_call_operand.hbm [shape: f32[4,1,128], index: 2, kind: input, shape index: {}]   ;;  %s1380_s3 = inlined_call_operand.hbm [shape: f32[4,8,128], index: 3, kind: output, shape index: {}]  }
   0x1   :  { %1383 = sst [smem:[#allocation15_spill]] %s1377_s0 }
   0x2   :  { %1384 = sst [smem:[#allocation16_spill]] %s1378_s1 }
   0x3   :  { %8 = vsyncpa [#allocation4], 0 }
   0x4   :  { %10 = vsyncpa [#allocation4 + $0x1], 0 }
   0x5   :  { %11 = vsyncpa [#allocation7], 0 }
   0x6   :  { %13 = vsyncpa [#allocation7 + $0x1], 0 }
   0x7   :  { %14 = vsyncpa [#allocation5], 0 }
   0x8   :  { %16 = vsyncpa [#allocation5 + $0x1], 0  ;;  %s1102_s12 = smov 0   ;;  %s1104_s13 = smov 0  }
   0x9   :  { %s1106_s14 = smov 0   ;;  %s1108_s15 = smov 0  }
   0xa   :  { %s1110_s16 = smov 0   ;;  %s1112_s17 = smov 0  }
   0xb LB: > { %s1133_s18 = sadd.s32 4294967295, %s1068_s17   ;;  %s686_s19 = sadd.s32 4294967294, %s1068_s17   ;;  %s1068_s17 = sphi %s1112_s17, %s22_s17   ;;  %s1064_s16 = sphi %s1110_s16, %s1402_s16   ;;  %s1060_s15 = sphi %s1108_s15, %s1401_s15   ;;  %s1056_s14 = sphi %s1106_s14, %s1400_s14   ;;  %s1052_s13 = sphi %s1104_s13, %s1399_s13   ;;  %s1048_s12 = sphi %s1102_s12, %s1398_s12  }
   0xc   : > { %s48_s20 = sadd.s32 1, %s1064_s16  ;;  %s59_s21 = sadd.s32 1, %s1056_s14 }
   0xd   : > { %p50_p0 = scmp.ge.s32.totalorder %s48_s20, 2  ;;  %p66_p1 = scmp.ne.s32.totalorder %s1056_s14, %s1052_s13 }
   0xe   : > { %p67_p2 = scmp.eq.s32.totalorder %s1068_s17, 0  ;;  %p72_p3 = scmp.ne.s32.totalorder %s1052_s13, %s1048_s12 }
   0xf   : > { %s1404_s20 = smov (%p50_p0, %s48_s20), 0  ;;  %p73_p5 = scmp.eq.s32.totalorder %s1133_s18, 0 }
  0x10   : > { %1385 = sst [smem:[#allocation13_spill]] %s1404_s20  ;;  %p1145_p4 = por %p67_p2, %p66_p1 }
  0x11   : > { %s52_s23 = ssub.s32 %s1064_s16, %s1404_s20  ;;  %p158_p6 = scmp.eq.s32.totalorder %s1133_s18, 1 }
  0x12   : > { %p57_p7 = scmp.eq.s32.totalorder %s52_s23, 0  ;;  %p1153_p8 = por %p73_p5, %p72_p3 }
  0x13   : > { %p1157_p9 = por %p158_p6, %p66_p1  ;;  %p164_p10 = scmp.eq.s32.totalorder %s686_s19, 1 }
  0x14   : > { %s1162_s26 = scalar_select %p57_p7, %s1056_s14, %s59_s21  }
  0x15   : > { %p1164_p11 = por %p164_p10, %p72_p3  ;;  %p688_p12 = scmp.ge.s32.totalorder %s1068_s17, 2 }
  0x16   : > { %1389 = sst [smem:[#allocation14_spill]] %s1162_s26  ;;  %p842_p13 = scmp.lt.s32.totalorder %s1068_s17, 2 }
  0x17   : > { %s1171_s28 = sand.u32 1, %s1056_s14   ;;  %s207_s30 = sand.u32 1, %s1068_s17  }
  0x18   : > { %p1175_p0 = pnand %p842_p13, %p1145_p4  ;;  %s692_s4 = sshll.u32 %s1171_s28, 8 }
  0x19   : > { %s713_s5 = sshll.u32 %s1064_s16, 12  ;;  %s211_s6 = scalar_lea.vmem [#allocation6], %s692_s4 }
  0x1a   : > { %s222_s7 = sshll.u32 %s211_s6, 4  ;;  %s1392_s1 = sld [smem:[#allocation16_spill]]  ;;  %s223_s7 = int_to_ptr.vmem [resolvable:$true] %s222_s7 }
  0x1b   : > { %s1185_s11 = scalar_lea.sflag [#allocation7], %s207_s30  ;;  %p902_p1 = pneg %p1175_p0 }
  0x1c   : > { %s913_s19 = scalar_lea.vmem %s223_s7, 4096  ;;  %s1070_s21 = smov [#allocation6]  }
  0x1d   : > { %p914_p2 = scmp.ne.s32.totalorder %s223_s7, %s913_s19  ;;  %s918_s22 = sshll.u32 %s1070_s21, 4  ;;  %s919_s22 = int_to_ptr.vmem [resolvable:$false] %s918_s22 }
  0x1e   : > { %s920_s23 = scalar_lea.vmem %s919_s22, 8192  ;;  %p921_p5 = scmp.lt.s32.totalorder %s223_s7, %s919_s22 }
  0x1f   : > { %p916_p3 = pnand %p914_p2, %p902_p1  ;;  %p922_p6 = scmp.lt.s32.totalorder %s920_s23, %s913_s19 }
  0x20   : > { %s221_s10 = scalar_lea.hbm %s1392_s1, %s713_s5 }
  0x21   : > { %p917_p4 = pneg %p916_p3  ;;  %p923_p7 = por %p922_p6, %p921_p5 }
  0x23   : > { %p924_p10 = pnand %p923_p7, %p917_p4 }
  0x25   : > { %927 = shalt.err (!%p924_p10)
}
  0x26   : > { %s1382_s4 = smov 128   ;;  %s1072_s30 = smov 8  }
  0x27   : > { %834 = dma.hbm_to_vmem [thread:$0]  (!%p1175_p0), %s221_s10, 4096, %s223_s7, %s1185_s11, %s1382_s4, %s1382_s4, %s1072_s30  }
  0x28   : > { %p699_p13 = scmp.ge.s32.totalorder %s1068_s17, 1  ;;  %p252_p2 = scmp.lt.s32.totalorder %s1068_s17, 3 }
  0x29   : > { %s689_s6 = sshll.u32 %s1171_s28, 4  ;;  %s711_s8 = sshll.u32 %s1064_s16, 8 }
  0x2a   : > { %p1200_p3 = pnand %p699_p13, %p252_p2  ;;  %s1394_s0 = sld [smem:[#allocation15_spill]] }
  0x2b   : > { %s188_s22 = scalar_lea.vmem [#allocation3], %s689_s6  ;;  %s696_s1 = sshll.u32 %s1171_s28, 1 }
  0x2c   : > { %s197_s23 = sshll.u32 %s188_s22, 4  ;;  %s185_s20 = scalar_lea.sflag [#allocation4], %s1171_s28  ;;  %s198_s23 = int_to_ptr.vmem [resolvable:$true] %s197_s23 }
  0x2d   : > { %s941_s26 = scalar_lea.vmem %s198_s23, 256  ;;  %s1073_s7 = smov [#allocation3]  }
  0x2e   : > { %p942_p4 = scmp.ne.s32.totalorder %s198_s23, %s941_s26  ;;  %s946_s10 = sshll.u32 %s1073_s7, 4  ;;  %s947_s10 = int_to_ptr.vmem [resolvable:$false] %s946_s10 }
  0x2f   : > { %s948_s4 = scalar_lea.vmem %s947_s10, 512  ;;  %p949_p7 = scmp.lt.s32.totalorder %s198_s23, %s947_s10 }
  0x30   : > { %s196_s21 = scalar_lea.hbm %s1394_s0, %s711_s8  ;;  %p944_p5 = pnand %p942_p4, %p902_p1 }
  0x31   : > { %p950_p10 = scmp.lt.s32.totalorder %s948_s4, %s941_s26 }
  0x32   : > { %p945_p6 = pneg %p944_p5 }
  0x33   : > { %p951_p13 = por %p950_p10, %p949_p7 }
  0x35   : > { %p952_p2 = pnand %p951_p13, %p945_p6 }
  0x37   : > { %955 = shalt.err (!%p952_p2)
}
  0x38   : > { %s1395_s6 = smov 128   ;;  %s714_s28 = sshll.u32 %s1064_s16, 5 }
  0x39   : > { %831 = dma.hbm_to_vmem [thread:$0]  (!%p1175_p0), %s196_s21, 256, %s198_s23, %s185_s20, %s1395_s6, %s1395_s6, %s1072_s30  }
  0x3a   : > { %s236_s8 = scalar_lea.vmem [#allocation8], %s696_s1  ;;  %s243_s7 = scalar_lea.hbm %s1379_s2, %s714_s28 }
  0x3b   : > { %s244_s9 = sshll.u32 %s236_s8, 4  ;;  %s1074_s4 = smov [#allocation8]   ;;  %s245_s9 = int_to_ptr.vmem [resolvable:$true] %s244_s9 }
  0x3c   : > { %s969_s26 = scalar_lea.vmem %s245_s9, 32  ;;  %s974_s10 = sshll.u32 %s1074_s4, 4  ;;  %s975_s10 = int_to_ptr.vmem [resolvable:$false] %s974_s10 }
  0x3d   : > { %p970_p4 = scmp.ne.s32.totalorder %s245_s9, %s969_s26  ;;  %s976_s0 = scalar_lea.vmem %s975_s10, 64 }
  0x3e   : > { %p977_p7 = scmp.lt.s32.totalorder %s245_s9, %s975_s10  ;;  %p978_p10 = scmp.lt.s32.totalorder %s976_s0, %s969_s26 }
  0x3f   : > { %p972_p5 = pnand %p970_p4, %p902_p1 }
  0x40   : > { %p979_p13 = por %p978_p10, %p977_p7 }
  0x41   : > { %p973_p6 = pneg %p972_p5 }
  0x43   : > { %p980_p2 = pnand %p979_p13, %p973_p6 }
  0x45   : > { %983 = shalt.err (!%p980_p2)
}
  0x46   : > { %s1075_s1 = smov 16   ;;  %s1076_s20 = smov 1  }
  0x47   : > { %837 = dma.hbm_to_vmem [thread:$0]  (!%p1175_p0), %s243_s7, 32, %s245_s9, %s1185_s11, %s1075_s1, %s1075_s1, %s1076_s20  }
  0x48   : > { %256 = sbr.rel (%p1200_p3) target bundleno = 324 (0x144), region = 32  ;;  %s1232_s30 = sand.u32 (!%p1200_p3), 1, %s1052_s13  }
  0x49   : > { %s700_s0 = sshll.u32 (!%p1200_p3), %s1232_s30, 4  ;;  %s259_s21 = scalar_lea.sflag (!%p1200_p3), [#allocation4], %s1232_s30 }
  0x4a   : > { %s1238_s23 = scalar_lea.vmem (!%p1200_p3), [#allocation3], %s700_s0 }
  0x4d   : > { %1035 = dma.done.wait (%p1153_p8), %s259_s21, 256  }
  0x4e   : > { %1037 = vsyncadd (%p1153_p8), %s259_s21, 4294967040  ;;  %s267_s29 = sand.u32 1, %s1133_s18   ;;  %s701_s11 = sshll.u32 %s1232_s30, 8 }
  0x4f   : > { %s268_s5 = scalar_lea.sflag [#allocation7], %s267_s29  ;;  %s1246_s6 = scalar_lea.vmem [#allocation6], %s701_s11 }
  0x50   : > { %1039 = dma.done.wait (%p1153_p8), %s268_s5, 4128  }
  0x51   : > { %1041 = vsyncadd (%p1153_p8), %s268_s5, 4294963168  ;;  %v1077_v0 = vmov 0.0   ;;  %vm1078_vm0 = vmmov 0   ;;  %v359_v1 = vld [vmem:[%s1246_s6 + $0x78] sm:$0xff]  ;;  %v358_v3 = vld [vmem:[%s1246_s6 + $0x70] sm:$0xff]  ;;  %s702_s18 = sshll.u32 %s1232_s30, 1 }
  0x52   : > { %750 = vmatprep.subr.mxu0 %v1077_v0  ;;  %785 = vmatprep.subr.mxu1 %v1077_v0  ;;  %v375_v2 = vld [vmem:[%s1246_s6 + $0xf8] sm:$0xff]  ;;  %v374_v4 = vld [vmem:[%s1246_s6 + $0xf0] sm:$0xff]  ;;  %v357_v5 = vld [vmem:[%s1246_s6 + $0x68] sm:$0xff]  ;;  %s312_s24 = scalar_lea.vmem [#allocation9], %s700_s0  ;;  %s715_s8 = sshll.u32 %s1060_s15, 8 }
  0x53   : > { %782 = vmatprep.mubr.msk.f32.mxu0 %vm1078_vm0, %v1077_v0  ;;  %817 = vmatprep.mubr.msk.f32.mxu1 %vm1078_vm0, %v1077_v0  ;;  %v373_v6 = vld [vmem:[%s1246_s6 + $0xe8] sm:$0xff]  ;;  %v356_v7 = vld [vmem:[%s1246_s6 + $0x60] sm:$0xff]  ;;  %v355_v9 = vld [vmem:[%s1246_s6 + $0x58] sm:$0xff]  ;;  %s543_s28 = sshll.u32 %s312_s24, 4  ;;  %s280_s9 = scalar_lea.vmem [#allocation8], %s702_s18  ;;  %s1324_s28 = int_to_ptr.vmem [resolvable:$true] %s543_s28 }
  0x54   : > { %751 = vmatpush3.msra.mxu0 %v359_v1  ;;  %786 = vmatpush3.msra.mxu1 %v375_v2  ;;  %v372_v8 = vld [vmem:[%s1246_s6 + $0xe0] sm:$0xff]  ;;  %v371_v10 = vld [vmem:[%s1246_s6 + $0xd8] sm:$0xff]  ;;  %v354_v11 = vld [vmem:[%s1246_s6 + $0x50] sm:$0xff]  ;;  %s1329_s7 = scalar_lea.hbm %s1380_s3, %s715_s8  ;;  %s528_s15 = scalar_lea.sflag [#allocation5], %s1232_s30 }
  0x55   : > { %752 = vmatprep.subr.mxu0 %v1077_v0  ;;  %787 = vmatprep.subr.mxu1 %v1077_v0  ;;  %v370_v12 = vld [vmem:[%s1246_s6 + $0xd0] sm:$0xff]  ;;  %v353_v13 = vld [vmem:[%s1246_s6 + $0x48] sm:$0xff]  ;;  %v352_v15 = vld [vmem:[%s1246_s6 + $0x40] sm:$0xff]  ;;  %s984_s26 = scalar_lea.vmem %s1324_s28, 256  ;;  %s1079_s4 = smov [#allocation9]  }
  0x56   : > { %753 = vmatpush3.msra.mxu0 %v358_v3  ;;  %788 = vmatpush3.msra.mxu1 %v374_v4  ;;  %v369_v14 = vld [vmem:[%s1246_s6 + $0xc8] sm:$0xff]  ;;  %v368_v16 = vld [vmem:[%s1246_s6 + $0xc0] sm:$0xff]  ;;  %v351_v17 = vld [vmem:[%s1246_s6 + $0x38] sm:$0xff]  ;;  %p985_p8 = scmp.ne.s32.totalorder %s1324_s28, %s984_s26  ;;  %s988_s10 = sshll.u32 %s1079_s4, 4  ;;  %s989_s10 = int_to_ptr.vmem [resolvable:$false] %s988_s10 }
  0x57   : > { %754 = vmatprep.subr.mxu0 %v1077_v0  ;;  %789 = vmatprep.subr.mxu1 %v1077_v0  ;;  %v367_v18 = vld [vmem:[%s1246_s6 + $0xb8] sm:$0xff]  ;;  %v350_v19 = vld [vmem:[%s1246_s6 + $0x30] sm:$0xff]  ;;  %v349_v21 = vld [vmem:[%s1246_s6 + $0x28] sm:$0xff]  ;;  %s990_s1 = scalar_lea.vmem %s989_s10, 512  ;;  %p991_p3 = scmp.lt.s32.totalorder %s1324_s28, %s989_s10 }
  0x58   : > { %755 = vmatpush3.msra.mxu0 %v357_v5  ;;  %790 = vmatpush3.msra.mxu1 %v373_v6  ;;  %v366_v20 = vld [vmem:[%s1246_s6 + $0xb0] sm:$0xff]  ;;  %v365_v22 = vld [vmem:[%s1246_s6 + $0xa8] sm:$0xff]  ;;  %v348_v23 = vld [vmem:[%s1246_s6 + $0x20] sm:$0xff]  ;;  %p986_p0 = pnand %p985_p8, %p1157_p9  ;;  %p992_p4 = scmp.lt.s32.totalorder %s990_s1, %s984_s26 }
  0x59   : > { %756 = vmatprep.subr.mxu0 %v1077_v0  ;;  %791 = vmatprep.subr.mxu1 %v1077_v0  ;;  %v364_v24 = vld [vmem:[%s1246_s6 + $0xa0] sm:$0xff]  ;;  %v347_v25 = vld [vmem:[%s1246_s6 + $0x18] sm:$0xff]  ;;  %v346_v27 = vld [vmem:[%s1246_s6 + $0x10] sm:$0xff] }
  0x5a   : > { %757 = vmatpush3.msra.mxu0 %v356_v7  ;;  %792 = vmatpush3.msra.mxu1 %v372_v8  ;;  %v363_v26 = vld [vmem:[%s1246_s6 + $0x98] sm:$0xff]  ;;  %v362_v28 = vld [vmem:[%s1246_s6 + $0x90] sm:$0xff]  ;;  %v345_v29 = vld [vmem:[%s1246_s6 + $0x8] sm:$0xff]  ;;  %p987_p1 = pneg %p986_p0  ;;  %p993_p5 = por %p992_p4, %p991_p3 }
  0x5b   : > { %758 = vmatprep.subr.mxu0 %v1077_v0  ;;  %793 = vmatprep.subr.mxu1 %v1077_v0  ;;  %v361_v30 = vld [vmem:[%s1246_s6 + $0x88] sm:$0xff]  ;;  %v344_v31 = vld [vmem:[%s1246_s6] sm:$0xff] }
  0x5c   : > { %759 = vmatpush3.msra.mxu0 %v355_v9  ;;  %794 = vmatpush3.msra.mxu1 %v371_v10  ;;  %v360_v32 = vld [vmem:[%s1246_s6 + $0x80] sm:$0xff]  ;;  %v343_v34 = vld [vmem:[%s1238_s23 + $0x8] sm:$0xff]  ;;  %p994_p6 = pnand %p993_p5, %p987_p1 }
  0x5d   : > { %760 = vmatprep.subr.mxu0 %v1077_v0  ;;  %795 = vmatprep.subr.mxu1 %v1077_v0  ;;  %v342_v33 = vld [vmem:[%s1238_s23] sm:$0xff] }
  0x5e   : > { %761 = vmatpush3.msra.mxu0 %v354_v11  ;;  %796 = vmatpush3.msra.mxu1 %v370_v12  ;;  %v704_v35 = vld [vmem:[%s280_s9] ss:$0 sm:$0xff]  ;;  %v705_v36 = vld [vmem:[%s280_s9 + $0x1] ss:$0 sm:$0xff] }
  0x5f   : > { %762 = vmatprep.subr.mxu0 %v1077_v0  ;;  %797 = vmatprep.subr.mxu1 %v1077_v0 }
  0x60   : > { %763 = vmatpush3.msra.mxu0 %v353_v13  ;;  %798 = vmatpush3.msra.mxu1 %v369_v14 }
  0x61   : > { %764 = vmatprep.subr.mxu0 %v1077_v0  ;;  %799 = vmatprep.subr.mxu1 %v1077_v0 }
  0x62   : > { %765 = vmatpush3.msra.mxu0 %v352_v15  ;;  %800 = vmatpush3.msra.mxu1 %v368_v16 }
  0x63   : > { %766 = vmatprep.subr.mxu0 %v1077_v0  ;;  %801 = vmatprep.subr.mxu1 %v1077_v0 }
  0x64   : > { %767 = vmatpush3.msra.mxu0 %v351_v17  ;;  %802 = vmatpush3.msra.mxu1 %v367_v18 }
  0x65   : > { %768 = vmatprep.subr.mxu0 %v1077_v0  ;;  %803 = vmatprep.subr.mxu1 %v1077_v0 }
  0x66   : > { %769 = vmatpush3.msra.mxu0 %v350_v19  ;;  %804 = vmatpush3.msra.mxu1 %v366_v20 }
  0x67   : > { %770 = vmatprep.subr.mxu0 %v1077_v0  ;;  %805 = vmatprep.subr.mxu1 %v1077_v0 }
  0x68   : > { %771 = vmatpush3.msra.mxu0 %v349_v21  ;;  %806 = vmatpush3.msra.mxu1 %v365_v22 }
  0x69   : > { %772 = vmatprep.subr.mxu0 %v1077_v0  ;;  %807 = vmatprep.subr.mxu1 %v1077_v0 }
  0x6a   : > { %773 = vmatpush3.msra.mxu0 %v348_v23  ;;  %808 = vmatpush3.msra.mxu1 %v364_v24 }
  0x6b   : > { %774 = vmatprep.subr.mxu0 %v1077_v0  ;;  %809 = vmatprep.subr.mxu1 %v1077_v0 }
  0x6c   : > { %775 = vmatpush3.msra.mxu0 %v347_v25  ;;  %810 = vmatpush3.msra.mxu1 %v363_v26 }
  0x6d   : > { %776 = vmatprep.subr.mxu0 %v1077_v0  ;;  %811 = vmatprep.subr.mxu1 %v1077_v0 }
  0x6e   : > { %777 = vmatpush3.msra.mxu0 %v346_v27  ;;  %812 = vmatpush3.msra.mxu1 %v362_v28 }
  0x6f   : > { %778 = vmatprep.subr.mxu0 %v1077_v0  ;;  %813 = vmatprep.subr.mxu1 %v1077_v0 }
  0x70   : > { %779 = vmatpush3.msra.mxu0 %v345_v29  ;;  %814 = vmatpush3.msra.mxu1 %v361_v30 }
  0x71   : > { %780 = vmatprep.subr.mxu0 %v1077_v0  ;;  %815 = vmatprep.subr.mxu1 %v1077_v0 }
  0x72   : > { %781 = vmatpush3.msra.mxu0 %v344_v31  ;;  %816 = vmatpush3.msra.mxu1 %v360_v32 }
  0x73   : > { %783 = vmatmul.mubr.f32.vlgmr.msra.gmra.mxu0 %v342_v33  ;;  %818 = vmatmul.mubr.f32.vlgmr.msra.gmra.mxu1 %v343_v34 }
 0x133   : > { %v442_v37 = vpop.f32.mrf.mxu0  ;;  %v512_v38 = vpop.f32.mrf.mxu1 }
 0x134   : > { %v516_v39 = vadd.f32 %v704_v35, %v442_v37  ;;  %v517_v40 = vadd.f32 %v705_v36, %v512_v38 }
 0x135   : > { %v784_v41 = vpop.f32.mrf.mxu0  ;;  %v819_v42 = vpop.f32.mrf.mxu1 }
 0x136   : > { %525 = vst [vmem:[%s312_s24] sm:$0xff] %v516_v39  ;;  %526 = vst [vmem:[%s312_s24 + $0x8] sm:$0xff] %v517_v40 }
 0x137   : > { %997 = shalt.err (!%p994_p6)
}
 0x138   : > { %s998_s20 = scalar_lea.hbm %s1329_s7, 256  ;;  %s1002_s23 = scalar_lea.hbm %s1380_s3, 512 }
 0x139   : > { %p999_p7 = scmp.ne.s32.totalorder %s1329_s7, %s998_s20  ;;  %p1003_p2 = scmp.lt.s32.totalorder %s1329_s7, %s1380_s3 }
 0x13a   : > { %p1004_p8 = scmp.lt.s32.totalorder %s1002_s23, %s998_s20 }
 0x13b   : > { %p1000_p10 = pnand %p999_p7, %p1157_p9 }
 0x13c   : > { %p1005_p0 = por %p1004_p8, %p1003_p2 }
 0x13d   : > { %p1001_p13 = pneg %p1000_p10 }
 0x13f   : > { %p1006_p1 = pnand %p1005_p0, %p1001_p13 }
 0x141   : > { %1009 = shalt.err (!%p1006_p1)
}
 0x142   : > { %s1080_s5 = smov 128   ;;  %s1081_s6 = smov 8  }
 0x143   : > { %826 = dma.vmem_to_hbm [thread:$0]  (%p1157_p9), %s1324_s28, 256, %s1329_s7, %s528_s15, %s1080_s5, %s1080_s5, %s1081_s6  }
 0x144 PF: > { %s558_s18 = sand.u32 1, %s1048_s12   ;;  %p839_p3 = pnand %p688_p12, %p1164_p11 }
 0x145   : > { %s559_s24 = scalar_lea.sflag [#allocation5], %s558_s18 }
 0x146   : > { %p840_p4 = pneg %p839_p3 }
 0x148   : > { %1043 = dma.done.wait (%p840_p4), %s559_s24, 256  }
 0x149   : > { %1045 = vsyncadd (%p840_p4), %s559_s24, 4294967040  ;;  %s22_s17 = sadd.s32 1, %s1068_s17   ;;  %s1396_s25 = sld [smem:[#allocation14_spill]] }
 0x14a   : > { %p19_p5 = scmp.ge.s32.totalorder %s22_s17, 4   ;;  %s1397_s30 = sld [smem:[#allocation13_spill]] }
 0x14b   : > { %s1398_s12 = smov %s1052_s13  ;;  %s1399_s13 = smov %s1056_s14 }
 0x14c   : > { %s1401_s15 = smov %s1064_s16  ;;  %21 = sbr.rel (!%p19_p5) target bundleno = 11 (0xb), region = 109 }
 0x14f   : > { %s1400_s14 = smov %s1396_s25 }
 0x150   : > { %s1402_s16 = smov %s1397_s30 }
 0x151   :  { %564 = vsyncpa [#allocation4], 1 }
 0x152   :  { %566 = vsyncpa [#allocation4 + $0x1], 1 }
 0x153   :  { %567 = vsyncpa [#allocation7], 1 }
 0x154   :  { %569 = vsyncpa [#allocation7 + $0x1], 1 }
 0x155   :  { %570 = vsyncpa [#allocation5], 1 }
 0x156   :  { %572 = vsyncpa [#allocation5 + $0x1], 1 }

</bundles_post_ra>
